<compile_context>
chip_gen: v6e
topology: v6e:2x2x1
jax: 0.10.0
libtpu: 0.0.40
codegen_flags: <defaults>
</compile_context>

<pallas_src>
import jax
import jax.numpy as jnp
import numpy as np
from jax import lax
from jax.experimental import pallas as pl
from jax.experimental.pallas import tpu as pltpu

BN_EPS = 1e-5


def fused_conv_bn_relu_kernel(w_ref, patch_ref, gamma_ref, beta_ref, o_ref):
    """conv-as-GEMM + training-mode BatchNorm + ReLU in a single VMEM-resident step.

    w_ref:     (Cout, K*K*Cin)   bf16 im2col weight matrix
    patch_ref: (K*K*Cin, N*H*W)  bf16 im2col activation patch (batch folded into lanes)
    gamma_ref: (Cout, 1)         f32 BN weight
    beta_ref:  (Cout, 1)         f32 BN bias
    o_ref:     (Cout, N*H*W)     f32 output, lane-dense
    """
    # Single deep-K GEMM on the MXU, f32 accumulation.
    y = jnp.dot(w_ref[...], patch_ref[...], preferred_element_type=jnp.float32)

    # Training-mode BatchNorm statistics over (N, H, W) == the lane axis here.
    inv_n = jnp.float32(1.0 / y.shape[1])
    mean = jnp.sum(y, axis=1, keepdims=True) * inv_n            # (Cout, 1)
    cent = y - mean
    var = jnp.sum(cent * cent, axis=1, keepdims=True) * inv_n   # biased batch variance

    scale = gamma_ref[...] * lax.rsqrt(var + BN_EPS)            # (Cout, 1)
    o_ref[...] = jnp.maximum(cent * scale + beta_ref[...], 0.0)


@jax.jit
def conv_module_forward(x_nchw, w_oihw, gamma, beta):
    """NCHW in / NCHW out, matching the PyTorch ConvModule forward (training-mode BN)."""
    N, Cin, H, W = x_nchw.shape
    Cout, Cin_w, K, K2 = w_oihw.shape
    assert Cin == Cin_w and K == K2
    pad = K // 2
    HW = H * W
    NHW = N * HW
    KKC = K * K * Cin

    # GEMM-orientation guard (see scaling notes at the top of the file).
    assert Cout <= 128, "For Cout >= 128 switch to pixels-in-M / Cout-in-lanes layout."
    # Fused single-step path requires everything to sit in VMEM with plenty of headroom.
    fused_bytes = 2 * (KKC * NHW + Cout * KKC) + 4 * (Cout * NHW + 2 * Cout)
    assert fused_bytes < 8 * 1024 * 1024, (
        "TODO(synk): fall back to a tiled (grid over pixel tiles) two-pass path here.")

    x = x_nchw.astype(jnp.float32)

    # ---- wrapper-side im2col layout plumbing (pure XLA, fuses into one relayout) ----
    # patch[(kh*K+kw)*Cin + ci, n*HW + h*W + w] = x_pad[n, ci, h+kh, w+kw]
    xp = jnp.pad(x, ((0, 0), (0, 0), (pad, pad), (pad, pad)))
    taps = jnp.stack([xp[:, :, kh:kh + H, kw:kw + W]
                      for kh in range(K) for kw in range(K)], axis=1)   # (N, KK, Cin, H, W)
    patch = jnp.transpose(taps, (1, 2, 0, 3, 4)).reshape(KKC, NHW).astype(jnp.bfloat16)
    # Weight as (Cout, K*K*Cin) with the matching (kh, kw, ci) row ordering.
    w_t = jnp.transpose(w_oihw.astype(jnp.float32), (0, 2, 3, 1)).reshape(Cout, KKC)
    w_t = w_t.astype(jnp.bfloat16)

    # ---- single fused kernel call, one grid step ----
    # At this size one v7x TensorCore idling is negligible (~300 KFLOPs total).
    out_flat = pl.pallas_call(
        fused_conv_bn_relu_kernel,
        out_shape=jax.ShapeDtypeStruct((Cout, NHW), jnp.float32),
        grid=(1,),
        in_specs=[pl.BlockSpec((Cout, KKC), lambda i: (0, 0)),
                  pl.BlockSpec((KKC, NHW), lambda i: (0, 0)),
                  pl.BlockSpec((Cout, 1), lambda i: (0, 0)),
                  pl.BlockSpec((Cout, 1), lambda i: (0, 0))],
        out_specs=pl.BlockSpec((Cout, NHW), lambda i: (0, 0)),
        compiler_params=pltpu.CompilerParams(dimension_semantics=("arbitrary",)),
    )(w_t, patch,
      gamma.astype(jnp.float32).reshape(Cout, 1),
      beta.astype(jnp.float32).reshape(Cout, 1))

    # Lane index is n*HW + pixel -> (Cout, N, H, W) -> NCHW (tiny 16 KB XLA transpose).
    return jnp.transpose(out_flat.reshape(Cout, N, H, W), (1, 0, 2, 3))


def reference_forward(x_nchw, w_oihw, gamma, beta, eps=BN_EPS):
    """Plain-JAX f32 reference matching PyTorch semantics (training-mode BN)."""
    K = w_oihw.shape[-1]
    pad = K // 2
    y = lax.conv_general_dilated(
        x_nchw.astype(jnp.float32),
        w_oihw.astype(jnp.float32),
        window_strides=(1, 1),
        padding=((pad, pad), (pad, pad)),
        dimension_numbers=("NCHW", "OIHW", "NCHW"),
    )
    mean = jnp.mean(y, axis=(0, 2, 3), keepdims=True)
    var = jnp.mean((y - mean) ** 2, axis=(0, 2, 3), keepdims=True)
    yn = (y - mean) * lax.rsqrt(var + eps)
    yn = yn * gamma.reshape(1, -1, 1, 1) + beta.reshape(1, -1, 1, 1)
    return jnp.maximum(yn, 0.0)


if __name__ == "__main__":
    # ConvModule(in_channels=4, out_channels=8, kernel_size=3)
    N, Cin, H, W = 2, 4, 16, 16
    Cout, K = 8, 3

    key = jax.random.PRNGKey(0)
    k_x, k_w, k_g, k_b = jax.random.split(key, 4)

    x = jax.random.normal(k_x, (N, Cin, H, W), dtype=jnp.float32)
    fan_in = Cin * K * K
    w = jax.random.normal(k_w, (Cout, Cin, K, K), dtype=jnp.float32) / jnp.sqrt(fan_in)
    gamma = 1.0 + 0.1 * jax.random.normal(k_g, (Cout,), dtype=jnp.float32)
    beta = 0.1 * jax.random.normal(k_b, (Cout,), dtype=jnp.float32)

    out = jax.block_until_ready(conv_module_forward(x, w, gamma, beta))
    ref = reference_forward(x, w, gamma, beta)

    # bf16 GEMM operands (f32 accumulation) introduce ~1e-2 worst-case abs error vs the
    # pure-f32 reference at these magnitudes; tolerance set accordingly.
    np.testing.assert_allclose(np.asarray(out), np.asarray(ref), atol=3e-2, rtol=3e-2)

    print("KERNEL_OK")
</pallas_src>

<mosaic_0001>
module attributes {stable_mosaic.version = 11 : i64} {
  func.func @fused_conv_bn_relu_kernel(%arg0: i32, %arg1: memref<8x36xbf16, #tpu.memory_space<vmem>>, %arg2: memref<36x512xbf16, #tpu.memory_space<vmem>>, %arg3: memref<8x1xf32, #tpu.memory_space<vmem>>, %arg4: memref<8x1xf32, #tpu.memory_space<vmem>>, %arg5: memref<8x512xf32, #tpu.memory_space<vmem>>) attributes {dimension_semantics = [#tpu.dimension_semantics<arbitrary>], iteration_bounds = array<i64: 1>, scalar_prefetch = 0 : i64, scratch_operands = 0 : i64, tpu.core_type = #tpu.core_type<tc>, window_params = [{pipeline_mode = #tpu.pipeline_mode<synchronous>, transform_indices = @transform_0, window_bounds = array<i64: 8, 36>}, {pipeline_mode = #tpu.pipeline_mode<synchronous>, transform_indices = @transform_1, window_bounds = array<i64: 36, 512>}, {pipeline_mode = #tpu.pipeline_mode<synchronous>, transform_indices = @transform_2, window_bounds = array<i64: 8, 1>}, {pipeline_mode = #tpu.pipeline_mode<synchronous>, transform_indices = @transform_3, window_bounds = array<i64: 8, 1>}, {pipeline_mode = #tpu.pipeline_mode<synchronous>, transform_indices = @transform_4, window_bounds = array<i64: 8, 512>}]} {
    %c0 = arith.constant 0 : index
    %c0_0 = arith.constant 0 : index
    %0 = vector.load %arg1[%c0, %c0_0] : memref<8x36xbf16, #tpu.memory_space<vmem>>, vector<8x36xbf16>
    %c0_1 = arith.constant 0 : index
    %c0_2 = arith.constant 0 : index
    %1 = vector.load %arg2[%c0_1, %c0_2] : memref<36x512xbf16, #tpu.memory_space<vmem>>, vector<36x512xbf16>
    %cst = arith.constant dense<0.000000e+00> : vector<8x512xf32>
    %2 = tpu.matmul %0, %1, %cst {dimension_numbers = #tpu.dot_dimension_numbers<[1], [0], [0], [1], [0, 0, 1, 1], [], []>} : vector<8x36xbf16>, vector<36x512xbf16>, vector<8x512xf32> -> vector<8x512xf32>
    %cst_3 = arith.constant dense<0.000000e+00> : vector<8xf32>
    %3 = vector.multi_reduction <add>, %2, %cst_3 [1] : vector<8x512xf32> to vector<8xf32>
    %4 = vector.shape_cast %3 : vector<8xf32> to vector<8x1xf32>
    %cst_4 = arith.constant 0.001953125 : f32
    %5 = vector.broadcast %cst_4 : f32 to vector<8x1xf32>
    %6 = arith.mulf %4, %5 : vector<8x1xf32>
    %7 = vector.broadcast %6 : vector<8x1xf32> to vector<8x512xf32>
    %8 = arith.subf %2, %7 : vector<8x512xf32>
    %9 = arith.mulf %8, %8 : vector<8x512xf32>
    %cst_5 = arith.constant dense<0.000000e+00> : vector<8xf32>
    %10 = vector.multi_reduction <add>, %9, %cst_5 [1] : vector<8x512xf32> to vector<8xf32>
    %11 = vector.shape_cast %10 : vector<8xf32> to vector<8x1xf32>
    %cst_6 = arith.constant 0.001953125 : f32
    %12 = vector.broadcast %cst_6 : f32 to vector<8x1xf32>
    %13 = arith.mulf %11, %12 : vector<8x1xf32>
    %c0_7 = arith.constant 0 : index
    %c0_8 = arith.constant 0 : index
    %14 = vector.load %arg3[%c0_7, %c0_8] : memref<8x1xf32, #tpu.memory_space<vmem>>, vector<8x1xf32>
    %cst_9 = arith.constant 9.99999974E-6 : f32
    %15 = vector.broadcast %cst_9 : f32 to vector<8x1xf32>
    %16 = arith.addf %13, %15 : vector<8x1xf32>
    %17 = math.rsqrt %16 : vector<8x1xf32>
    %18 = arith.mulf %14, %17 : vector<8x1xf32>
    %19 = vector.broadcast %18 : vector<8x1xf32> to vector<8x512xf32>
    %20 = arith.mulf %8, %19 : vector<8x512xf32>
    %c0_10 = arith.constant 0 : index
    %c0_11 = arith.constant 0 : index
    %21 = vector.load %arg4[%c0_10, %c0_11] : memref<8x1xf32, #tpu.memory_space<vmem>>, vector<8x1xf32>
    %22 = vector.broadcast %21 : vector<8x1xf32> to vector<8x512xf32>
    %23 = arith.addf %20, %22 : vector<8x512xf32>
    %cst_12 = arith.constant 0.000000e+00 : f32
    %24 = vector.broadcast %cst_12 : f32 to vector<8x512xf32>
    %25 = arith.maximumf %23, %24 : vector<8x512xf32>
    %c0_13 = arith.constant 0 : index
    %c0_14 = arith.constant 0 : index
    %26 = vector.load %arg5[%c0_13, %c0_14] : memref<8x512xf32, #tpu.memory_space<vmem>>, vector<8x512xf32>
    tpu.vector_store %arg5[%c0_13, %c0_14], %25 {strides = array<i32>} : memref<8x512xf32, #tpu.memory_space<vmem>>, vector<8x512xf32>,
    return
  }
  func.func @transform_0(%arg0: i32) -> (i32, i32) {
    %c0_i32 = arith.constant 0 : i32
    %c0_i32_0 = arith.constant 0 : i32
    %c0_i32_1 = arith.constant 0 : i32
    return %c0_i32, %c0_i32_0 : i32, i32
  }
  func.func @transform_1(%arg0: i32) -> (i32, i32) {
    %c0_i32 = arith.constant 0 : i32
    %c0_i32_0 = arith.constant 0 : i32
    %c0_i32_1 = arith.constant 0 : i32
    return %c0_i32, %c0_i32_0 : i32, i32
  }
  func.func @transform_2(%arg0: i32) -> (i32, i32) {
    %c0_i32 = arith.constant 0 : i32
    %c0_i32_0 = arith.constant 0 : i32
    %c0_i32_1 = arith.constant 0 : i32
    return %c0_i32, %c0_i32_0 : i32, i32
  }
  func.func @transform_3(%arg0: i32) -> (i32, i32) {
    %c0_i32 = arith.constant 0 : i32
    %c0_i32_0 = arith.constant 0 : i32
    %c0_i32_1 = arith.constant 0 : i32
    return %c0_i32, %c0_i32_0 : i32, i32
  }
  func.func @transform_4(%arg0: i32) -> (i32, i32) {
    %c0_i32 = arith.constant 0 : i32
    %c0_i32_0 = arith.constant 0 : i32
    %c0_i32_1 = arith.constant 0 : i32
    return %c0_i32, %c0_i32_0 : i32, i32
  }
}

</mosaic_0001>

<bundles_post_ra>
// kernel: conv_module_forward.1
= control target key start
LH: loop header
LB: loop body
LE: loop exit
PB: predicated region body
PF: predicated region fallthrough
CT: control target
= control target key end

     0   :  { %vm83_vm0 = vcmask 1041408   ;;  %v270_v2 = vmov 0   ;;  %vm79_vm1 = vcmask 293888   ;;  %s351_s1 = inlined_call_operand.vmem [shape: bf16[36,512], index: 1, kind: input, shape index: {}]   ;;  %s352_s0 = inlined_call_operand.vmem [shape: bf16[8,36], index: 0, kind: input, shape index: {}]   ;;  %s353_s2 = inlined_call_operand.vmem [shape: f32[8,1], index: 2, kind: input, shape index: {}]   ;;  %s354_s3 = inlined_call_operand.vmem [shape: f32[8,1], index: 3, kind: input, shape index: {}]   ;;  %s355_s4 = inlined_call_operand.vmem [shape: f32[8,512], index: 4, kind: output, shape index: {}]  }
   0x1   :  { %v27_v0 = vld [vmem:[%s351_s1 + $0x40] sm:$0x33]  ;;  %v28_v1 = vld [vmem:[%s351_s1 + $0x48] sm:$0x33]  ;;  %128 = vmatprep.mubr.bf16.mxu0 %v270_v2  ;;  %169 = vmatprep.mubr.bf16.mxu1 %v270_v2 }
   0x2   :  { %v242_v3 = vcombine.high %v27_v0, %v27_v0  ;;  %v244_v4 = vcombine.high %v28_v1, %v28_v1  ;;  %v241_v5 = vcombine.low %v27_v0, %v27_v0  ;;  %v243_v6 = vcombine.low %v28_v1, %v28_v1  ;;  %v256_v7 = vld [vmem:[%s351_s1 + $0x24] ss:$16 sps:$4 sm:$0xff]   ;;  %250 = vset.pattern.permute.xlu1 %v270_v2  ;;  %v258_v8 = vld [vmem:[%s351_s1 + $0x2c] ss:$16 sps:$4 sm:$0xff]   ;;  %v260_v11 = vld [vmem:[%s351_s1 + $0x20] ss:$16 sps:$4 sm:$0xff]  }
   0x3   :  { %251 = vset.pattern.permute.xlu0 %v270_v2  ;;  %v261_v12 = vld [vmem:[%s351_s1 + $0x28] ss:$16 sps:$4 sm:$0xff]   ;;  %v262_v13 = vld [vmem:[%s351_s1 + $0x4] ss:$16 sps:$4 sm:$0xff]   ;;  %v264_v14 = vld [vmem:[%s351_s1 + $0xc] ss:$16 sps:$4 sm:$0xff]  }
   0x4   :  { %245 = vmatprep.subr.msk.bf16.mxu0 %vm83_vm0, %v242_v3  ;;  %247 = vmatprep.subr.msk.bf16.mxu1 %vm83_vm0, %v244_v4  ;;  %v85_v9 = vsel %vm83_vm0, %v241_v5, 0  ;;  %v91_v10 = vsel %vm83_vm0, %v243_v6, 0  ;;  %v266_v15 = vld [vmem:[%s351_s1] ss:$16 sps:$4 sm:$0xff]   ;;  %v267_v16 = vld [vmem:[%s351_s1 + $0x8] ss:$16 sps:$4 sm:$0xff]  }
   0x5   :  { %107 = vmatpush1.bf16.msra.mxu0 %v85_v9  ;;  %148 = vmatpush1.bf16.msra.mxu1 %v91_v10  ;;  %v18_v17 = vld [vmem:[%s352_s0] sm:$0xf] }
   0x6   :  { %108 = vmatprep.subr.bf16.mxu0 %v256_v7  ;;  %149 = vmatprep.subr.bf16.mxu1 %v258_v8  ;;  %v198_v45 = vld [vmem:[%s353_s2] sm:$0xff] }
   0x7   :  { %v211_v48 = vld [vmem:[%s354_s3] sm:$0xff] }
   0x9   :  { %109 = vmatpush1.bf16.msra.mxu0 %v260_v11  ;;  %150 = vmatpush1.bf16.msra.mxu1 %v261_v12 }
   0xa   :  { %110 = vmatprep.subr.bf16.mxu0 %v262_v13  ;;  %151 = vmatprep.subr.bf16.mxu1 %v264_v14 }
   0xd   :  { %111 = vmatpush1.bf16.msra.mxu0 %v266_v15  ;;  %152 = vmatpush1.bf16.msra.mxu1 %v267_v16 }
  0x10   :  { %246 = vmatmul.mubr.msk.bf16.vlgmr.msra.gmra.mxu0 %vm79_vm1, %v18_v17  ;;  %248 = vmatmul.mubr.msk.bf16.vlgmr.msra.gmra.mxu1 %vm79_vm1, %v18_v17 }
  0xd0   :  { %v130_v18 = vpop.f32.mrf.mxu0  ;;  %v171_v19 = vpop.f32.mrf.mxu1 }
  0xd2   :  { %v132_v20 = vpop.f32.mrf.mxu0  ;;  %v173_v21 = vpop.f32.mrf.mxu1 }
  0xd3   :  { %v178_v22 = vadd.f32 %v132_v20, %v130_v18 }
  0xd4   :  { %v134_v23 = vpop.f32.mrf.mxu0  ;;  %v175_v24 = vpop.f32.mrf.mxu1 }
  0xd5   :  { %v179_v25 = vadd.f32 %v178_v22, %v171_v19 }
  0xd6   :  { %v135_v26 = vpop.f32.mrf.mxu0  ;;  %v176_v27 = vpop.f32.mrf.mxu1 }
  0xd7   :  { %v180_v28 = vadd.f32 %v179_v25, %v173_v21 }
  0xd9   :  { %181 = vadd.xlane.f32.xlu0 %v180_v28 }
 0x162   :  { %v182_v29 = vpop.xlane.xlu0 %181 }
 0x163   :  { %v183_v30 = vmul.f32 0.001953125, %v182_v29 }
 0x165   :  { %v184_v31 = vsub.f32 %v130_v18, %v183_v30  ;;  %v185_v32 = vsub.f32 %v132_v20, %v183_v30  ;;  %v186_v33 = vsub.f32 %v171_v19, %v183_v30  ;;  %v187_v34 = vsub.f32 %v173_v21, %v183_v30 }
 0x167   :  { %v188_v35 = vmul.f32 %v184_v31, %v184_v31  ;;  %v189_v36 = vmul.f32 %v185_v32, %v185_v32  ;;  %v190_v37 = vmul.f32 %v186_v33, %v186_v33  ;;  %v191_v39 = vmul.f32 %v187_v34, %v187_v34 }
 0x169   :  { %v192_v38 = vadd.f32 %v189_v36, %v188_v35 }
 0x16b   :  { %v193_v40 = vadd.f32 %v192_v38, %v190_v37 }
 0x16d   :  { %v194_v41 = vadd.f32 %v193_v40, %v191_v39 }
 0x16f   :  { %195 = vadd.xlane.f32.xlu0 %v194_v41 }
 0x1f8   :  { %v196_v42 = vpop.xlane.xlu0 %195 }
 0x1f9   :  { %v197_v43 = vmul.f32 0.001953125, %v196_v42 }
 0x1fb   :  { %v199_v44 = vadd.f32 1e-05, %v197_v43 }
 0x1fd   :  { %268 = vrsqrt.f32 %v199_v44 }
 0x20a   :  { %v269_v46 = vpop.eup %268 }
 0x20b   :  { %v201_v47 = vmul.f32 %v269_v46, %v198_v45 }
 0x20d   :  { %204 = vperm.xlu1 %250, %v201_v47  }
 0x211   :  { %214 = vperm.xlu1 %250, %v211_v48  }
 0x288   :  { %v205_v49 = vpop.permute.xlu1 %204 }
 0x289   :  { %v207_v50 = vmul.f32 %v205_v49, %v184_v31  ;;  %v208_v51 = vmul.f32 %v205_v49, %v185_v32  ;;  %v209_v52 = vmul.f32 %v205_v49, %v186_v33  ;;  %v210_v53 = vmul.f32 %v205_v49, %v187_v34 }
 0x28c   :  { %v215_v54 = vpop.permute.xlu1 %214 }
 0x28d   :  { %v217_v55 = vadd.f32 %v215_v54, %v207_v50  ;;  %v218_v56 = vadd.f32 %v215_v54, %v208_v51  ;;  %v219_v57 = vadd.f32 %v215_v54, %v209_v52  ;;  %v220_v58 = vadd.f32 %v215_v54, %v210_v53 }
 0x28f   :  { %v221_v59 = vmax.f32 %v217_v55, 0.0  ;;  %v222_v60 = vmax.f32 %v218_v56, 0.0  ;;  %v223_v61 = vmax.f32 %v219_v57, 0.0  ;;  %v224_v62 = vmax.f32 %v220_v58, 0.0 }
 0x291   :  { %225 = vst [vmem:[%s355_s4] sm:$0xff] %v221_v59  ;;  %226 = vst [vmem:[%s355_s4 + $0x8] sm:$0xff] %v222_v60 }
 0x292   :  { %227 = vst [vmem:[%s355_s4 + $0x10] sm:$0xff] %v223_v61  ;;  %228 = vst [vmem:[%s355_s4 + $0x18] sm:$0xff] %v224_v62 }

</bundles_post_ra>
